<compile_context>
chip_gen: v6e
topology: v6e:2x2x1
jax: 0.10.0
libtpu: 0.0.40
codegen_flags: <defaults>
</compile_context>

<pallas_src>
import math

import jax
import jax.numpy as jnp
from jax.experimental import pallas as pl
from jax.experimental.pallas import tpu as pltpu


_TARGET_BLOCK_BYTES = 2 << 20          # HBM-facing bytes per input block
_VMEM_LIMIT_BYTES = 32 * 1024 * 1024   # safe on v5e/v6e (128 MiB) and v7x (64 MiB)


def _make_rsoftmax_kernel(radix, cardinality, rchan, fold):
    """Softmax over radix groups of a lane-dense (bt, fold*C) block.

    Each block row packs `fold` logical batch rows. Within a logical row:
      input  lane = g*(radix*rchan) + r*rchan + c       (natural NCHW order)
      output lane = r*(cardinality*rchan) + g*rchan + c (PyTorch transposed order)
    The permutation is materialized once via an in-register concatenate, so the
    final write is a single full-width unmasked store.
    """
    R, G, rc = radix, cardinality, rchan
    C = G * R * rc

    def kernel(x_ref, o_ref):
        x = x_ref[...]                      # one dense load, native dtype
        pieces = [None] * (fold * R * G)    # output lane order: (fold_row, r, g)
        for b in range(fold):
            base = b * C
            for g in range(G):
                slabs = [
                    x[:, base + (g * R + r) * rc: base + (g * R + r + 1) * rc]
                    .astype(jnp.float32)
                    for r in range(R)
                ]
                if R == 2:
                    # softmax([x0, x1]) == [1, e] / (1 + e) with e = exp(x1 - x0)
                    d = jnp.clip(slabs[1] - slabs[0], -80.0, 80.0)
                    e = jnp.exp(d)
                    inv = 1.0 / (1.0 + e)       # exact division (parity with softmax)
                    probs = [inv, e * inv]
                else:
                    m = slabs[0]
                    for t in slabs[1:]:
                        m = jnp.maximum(m, t)
                    es = [jnp.exp(t - m) for t in slabs]
                    s = es[0]
                    for t in es[1:]:
                        s = s + t
                    inv = 1.0 / s               # exact division
                    probs = [e * inv for e in es]
                for r in range(R):
                    pieces[(b * R + r) * G + g] = probs[r].astype(o_ref.dtype)
        o_ref[...] = jnp.concatenate(pieces, axis=-1)   # single unmasked store

    return kernel


def _sigmoid_kernel(x_ref, o_ref):
    x = x_ref[...].astype(jnp.float32)   # f32 core math (mandatory on v5e)
    o_ref[...] = (1.0 / (1.0 + jnp.exp(-x))).astype(o_ref.dtype)


def _pick_fold(batch, row_len):
    """Fold k consecutive batch rows into lanes when a row is narrower than a vreg."""
    if row_len >= 128 or row_len <= 0 or 128 % row_len != 0:
        return 1
    k = 128 // row_len                    # power of two
    while k > 1 and batch % k != 0:
        k //= 2
    return k


def _pick_row_tile(nrows, row_bytes):
    """Rows per block: whole batch if it fits the byte budget, else a multiple of 8."""
    if nrows * row_bytes <= _TARGET_BLOCK_BYTES:
        return nrows
    bt = (_TARGET_BLOCK_BYTES // max(row_bytes, 1)) // 8 * 8
    # NOTE: if even 8 rows exceed the budget (astronomical C -- never true for rSoftMax)
    # the channel dim would need tiling too; rSoftMax rows are a few KB at most.
    return int(max(8, min(bt, nrows)))


def _run_rowwise(x2, kernel, out_dtype):
    """Run `kernel` over (rows, width) with lane-dense (bt, width) blocks, grid over rows."""
    nrows, width = x2.shape
    itemsize = x2.dtype.itemsize
    bt = _pick_row_tile(nrows, width * itemsize)
    padded = pl.cdiv(nrows, bt) * bt
    if padded != nrows:
        x2 = jnp.pad(x2, ((0, padded - nrows), (0, 0)))   # tail rows dropped at the end
    nsteps = padded // bt
    out = pl.pallas_call(
        kernel,
        out_shape=jax.ShapeDtypeStruct((padded, width), out_dtype),
        grid=(nsteps,),
        in_specs=[pl.BlockSpec((bt, width), lambda i: (i, 0))],
        out_specs=pl.BlockSpec((bt, width), lambda i: (i, 0)),
        compiler_params=pltpu.CompilerParams(
            dimension_semantics=("parallel",),
            vmem_limit_bytes=_VMEM_LIMIT_BYTES,
        ),
        cost_estimate=pl.CostEstimate(
            flops=6 * padded * width,
            transcendentals=padded * width,
            bytes_accessed=2 * padded * width * itemsize,
        ),
    )(x2)
    if padded != nrows:
        out = out[:nrows]
    return out


def rsoftmax(x, radix, cardinality):
    """JAX/Pallas equivalent of ResNeSt rSoftMax.forward. x: (B, C, 1, 1)."""
    batch = x.shape[0]
    n = math.prod(x.shape[1:])
    fold = _pick_fold(batch, n)
    x2 = x.reshape(batch // fold, fold * n)       # free contiguous view
    if radix > 1:
        assert n % (radix * cardinality) == 0
        rchan = n // (radix * cardinality)
        kernel = _make_rsoftmax_kernel(radix, cardinality, rchan, fold)
        out = _run_rowwise(x2, kernel, x.dtype)
        return out.reshape(batch, n)              # == PyTorch reshape(batch, -1)
    out = _run_rowwise(x2, _sigmoid_kernel, x.dtype)
    return out.reshape(x.shape)                   # torch.sigmoid preserves the shape


def _rsoftmax_ref(x, radix, cardinality):
    batch = x.shape[0]
    if radix > 1:
        xr = x.reshape(batch, cardinality, radix, -1)
        xr = jnp.transpose(xr, (0, 2, 1, 3))
        xr = jax.nn.softmax(xr, axis=1)
        return xr.reshape(batch, -1)
    return jax.nn.sigmoid(x)


if __name__ == "__main__":
    key = jax.random.PRNGKey(0)
    k1, k2, k3, k4 = jax.random.split(key, 4)
    ATOL, RTOL = 1e-6, 1e-4   # exact math now; tolerance only covers op-ordering ulps

    # radix > 1: B=2, cardinality=4, radix=2, rchan=8 -> C = 64 (exercises lane folding)
    batch, cardinality, radix, rchan = 2, 4, 2, 8
    C = cardinality * radix * rchan
    x = jax.random.normal(k1, (batch, C, 1, 1), dtype=jnp.float32)
    y = jax.block_until_ready(rsoftmax(x, radix=radix, cardinality=cardinality))
    y_ref = _rsoftmax_ref(x, radix, cardinality)
    assert y.shape == (batch, C)
    assert jnp.allclose(y, y_ref, atol=ATOL, rtol=RTOL), float(jnp.max(jnp.abs(y - y_ref)))

    # radix > 1, cardinality == 1 (typical ResNeSt block): B=8, radix=2, rchan=64 -> C=128
    batch2, card2, radix2, rchan2 = 8, 1, 2, 64
    C2 = card2 * radix2 * rchan2
    xb = jax.random.normal(k2, (batch2, C2, 1, 1), dtype=jnp.float32)
    yb = jax.block_until_ready(rsoftmax(xb, radix=radix2, cardinality=card2))
    yb_ref = _rsoftmax_ref(xb, radix2, card2)
    assert yb.shape == (batch2, C2)
    assert jnp.allclose(yb, yb_ref, atol=ATOL, rtol=RTOL), float(jnp.max(jnp.abs(yb - yb_ref)))

    # radix = 4 exercises the general (non radix-2) softmax path, odd batch: B=3, G=2
    batch3, card3, radix3, rchan3 = 3, 2, 4, 16
    C3 = card3 * radix3 * rchan3
    xc = jax.random.normal(k3, (batch3, C3, 1, 1), dtype=jnp.float32)
    yc = jax.block_until_ready(rsoftmax(xc, radix=radix3, cardinality=card3))
    yc_ref = _rsoftmax_ref(xc, radix3, card3)
    assert yc.shape == (batch3, C3)
    assert jnp.allclose(yc, yc_ref, atol=ATOL, rtol=RTOL), float(jnp.max(jnp.abs(yc - yc_ref)))

    # radix == 1 path (sigmoid), shape preserved
    x1 = jax.random.normal(k4, (batch, 16, 1, 1), dtype=jnp.float32)
    y1 = jax.block_until_ready(rsoftmax(x1, radix=1, cardinality=cardinality))
    assert y1.shape == x1.shape
    assert jnp.allclose(y1, jax.nn.sigmoid(x1), atol=ATOL, rtol=RTOL)

    print("KERNEL_OK")
</pallas_src>

<mosaic_0001>
module attributes {stable_mosaic.version = 11 : i64} {
  func.func @kernel(%arg0: i32, %arg1: memref<1x128xf32, #tpu.memory_space<vmem>>, %arg2: memref<1x128xf32, #tpu.memory_space<vmem>>) attributes {dimension_semantics = [#tpu.dimension_semantics<parallel>], iteration_bounds = array<i64: 1>, scalar_prefetch = 0 : i64, scratch_operands = 0 : i64, tpu.core_type = #tpu.core_type<tc>, window_params = [{transform_indices = @transform_0, window_bounds = array<i64: 1, 128>}, {transform_indices = @transform_1, window_bounds = array<i64: 1, 128>}]} {
    %c0 = arith.constant 0 : index
    %c0_0 = arith.constant 0 : index
    %0 = vector.load %arg1[%c0, %c0_0] : memref<1x128xf32, #tpu.memory_space<vmem>>, vector<1x128xf32>
    %1 = vector.extract_strided_slice %0 {offsets = [0, 0], sizes = [1, 8], strides = [1, 1]} : vector<1x128xf32> to vector<1x8xf32>
    %2 = vector.extract_strided_slice %0 {offsets = [0, 8], sizes = [1, 8], strides = [1, 1]} : vector<1x128xf32> to vector<1x8xf32>
    %3 = arith.subf %2, %1 : vector<1x8xf32>
    %cst = arith.constant -8.000000e+01 : f32
    %cst_1 = arith.constant 8.000000e+01 : f32
    %4 = vector.broadcast %cst : f32 to vector<1x8xf32>
    %5 = arith.maximumf %4, %3 : vector<1x8xf32>
    %6 = vector.broadcast %cst_1 : f32 to vector<1x8xf32>
    %7 = arith.minimumf %6, %5 : vector<1x8xf32>
    %8 = math.exp %7 : vector<1x8xf32>
    %cst_2 = arith.constant 1.000000e+00 : f32
    %9 = vector.broadcast %cst_2 : f32 to vector<1x8xf32>
    %10 = arith.addf %9, %8 : vector<1x8xf32>
    %cst_3 = arith.constant 1.000000e+00 : f32
    %11 = vector.broadcast %cst_3 : f32 to vector<1x8xf32>
    %12 = arith.divf %11, %10 : vector<1x8xf32>
    %13 = arith.mulf %8, %12 : vector<1x8xf32>
    %14 = vector.extract_strided_slice %0 {offsets = [0, 16], sizes = [1, 8], strides = [1, 1]} : vector<1x128xf32> to vector<1x8xf32>
    %15 = vector.extract_strided_slice %0 {offsets = [0, 24], sizes = [1, 8], strides = [1, 1]} : vector<1x128xf32> to vector<1x8xf32>
    %16 = arith.subf %15, %14 : vector<1x8xf32>
    %cst_4 = arith.constant -8.000000e+01 : f32
    %cst_5 = arith.constant 8.000000e+01 : f32
    %17 = vector.broadcast %cst_4 : f32 to vector<1x8xf32>
    %18 = arith.maximumf %17, %16 : vector<1x8xf32>
    %19 = vector.broadcast %cst_5 : f32 to vector<1x8xf32>
    %20 = arith.minimumf %19, %18 : vector<1x8xf32>
    %21 = math.exp %20 : vector<1x8xf32>
    %cst_6 = arith.constant 1.000000e+00 : f32
    %22 = vector.broadcast %cst_6 : f32 to vector<1x8xf32>
    %23 = arith.addf %22, %21 : vector<1x8xf32>
    %cst_7 = arith.constant 1.000000e+00 : f32
    %24 = vector.broadcast %cst_7 : f32 to vector<1x8xf32>
    %25 = arith.divf %24, %23 : vector<1x8xf32>
    %26 = arith.mulf %21, %25 : vector<1x8xf32>
    %27 = vector.extract_strided_slice %0 {offsets = [0, 32], sizes = [1, 8], strides = [1, 1]} : vector<1x128xf32> to vector<1x8xf32>
    %28 = vector.extract_strided_slice %0 {offsets = [0, 40], sizes = [1, 8], strides = [1, 1]} : vector<1x128xf32> to vector<1x8xf32>
    %29 = arith.subf %28, %27 : vector<1x8xf32>
    %cst_8 = arith.constant -8.000000e+01 : f32
    %cst_9 = arith.constant 8.000000e+01 : f32
    %30 = vector.broadcast %cst_8 : f32 to vector<1x8xf32>
    %31 = arith.maximumf %30, %29 : vector<1x8xf32>
    %32 = vector.broadcast %cst_9 : f32 to vector<1x8xf32>
    %33 = arith.minimumf %32, %31 : vector<1x8xf32>
    %34 = math.exp %33 : vector<1x8xf32>
    %cst_10 = arith.constant 1.000000e+00 : f32
    %35 = vector.broadcast %cst_10 : f32 to vector<1x8xf32>
    %36 = arith.addf %35, %34 : vector<1x8xf32>
    %cst_11 = arith.constant 1.000000e+00 : f32
    %37 = vector.broadcast %cst_11 : f32 to vector<1x8xf32>
    %38 = arith.divf %37, %36 : vector<1x8xf32>
    %39 = arith.mulf %34, %38 : vector<1x8xf32>
    %40 = vector.extract_strided_slice %0 {offsets = [0, 48], sizes = [1, 8], strides = [1, 1]} : vector<1x128xf32> to vector<1x8xf32>
    %41 = vector.extract_strided_slice %0 {offsets = [0, 56], sizes = [1, 8], strides = [1, 1]} : vector<1x128xf32> to vector<1x8xf32>
    %42 = arith.subf %41, %40 : vector<1x8xf32>
    %cst_12 = arith.constant -8.000000e+01 : f32
    %cst_13 = arith.constant 8.000000e+01 : f32
    %43 = vector.broadcast %cst_12 : f32 to vector<1x8xf32>
    %44 = arith.maximumf %43, %42 : vector<1x8xf32>
    %45 = vector.broadcast %cst_13 : f32 to vector<1x8xf32>
    %46 = arith.minimumf %45, %44 : vector<1x8xf32>
    %47 = math.exp %46 : vector<1x8xf32>
    %cst_14 = arith.constant 1.000000e+00 : f32
    %48 = vector.broadcast %cst_14 : f32 to vector<1x8xf32>
    %49 = arith.addf %48, %47 : vector<1x8xf32>
    %cst_15 = arith.constant 1.000000e+00 : f32
    %50 = vector.broadcast %cst_15 : f32 to vector<1x8xf32>
    %51 = arith.divf %50, %49 : vector<1x8xf32>
    %52 = arith.mulf %47, %51 : vector<1x8xf32>
    %53 = vector.extract_strided_slice %0 {offsets = [0, 64], sizes = [1, 8], strides = [1, 1]} : vector<1x128xf32> to vector<1x8xf32>
    %54 = vector.extract_strided_slice %0 {offsets = [0, 72], sizes = [1, 8], strides = [1, 1]} : vector<1x128xf32> to vector<1x8xf32>
    %55 = arith.subf %54, %53 : vector<1x8xf32>
    %cst_16 = arith.constant -8.000000e+01 : f32
    %cst_17 = arith.constant 8.000000e+01 : f32
    %56 = vector.broadcast %cst_16 : f32 to vector<1x8xf32>
    %57 = arith.maximumf %56, %55 : vector<1x8xf32>
    %58 = vector.broadcast %cst_17 : f32 to vector<1x8xf32>
    %59 = arith.minimumf %58, %57 : vector<1x8xf32>
    %60 = math.exp %59 : vector<1x8xf32>
    %cst_18 = arith.constant 1.000000e+00 : f32
    %61 = vector.broadcast %cst_18 : f32 to vector<1x8xf32>
    %62 = arith.addf %61, %60 : vector<1x8xf32>
    %cst_19 = arith.constant 1.000000e+00 : f32
    %63 = vector.broadcast %cst_19 : f32 to vector<1x8xf32>
    %64 = arith.divf %63, %62 : vector<1x8xf32>
    %65 = arith.mulf %60, %64 : vector<1x8xf32>
    %66 = vector.extract_strided_slice %0 {offsets = [0, 80], sizes = [1, 8], strides = [1, 1]} : vector<1x128xf32> to vector<1x8xf32>
    %67 = vector.extract_strided_slice %0 {offsets = [0, 88], sizes = [1, 8], strides = [1, 1]} : vector<1x128xf32> to vector<1x8xf32>
    %68 = arith.subf %67, %66 : vector<1x8xf32>
    %cst_20 = arith.constant -8.000000e+01 : f32
    %cst_21 = arith.constant 8.000000e+01 : f32
    %69 = vector.broadcast %cst_20 : f32 to vector<1x8xf32>
    %70 = arith.maximumf %69, %68 : vector<1x8xf32>
    %71 = vector.broadcast %cst_21 : f32 to vector<1x8xf32>
    %72 = arith.minimumf %71, %70 : vector<1x8xf32>
    %73 = math.exp %72 : vector<1x8xf32>
    %cst_22 = arith.constant 1.000000e+00 : f32
    %74 = vector.broadcast %cst_22 : f32 to vector<1x8xf32>
    %75 = arith.addf %74, %73 : vector<1x8xf32>
    %cst_23 = arith.constant 1.000000e+00 : f32
    %76 = vector.broadcast %cst_23 : f32 to vector<1x8xf32>
    %77 = arith.divf %76, %75 : vector<1x8xf32>
    %78 = arith.mulf %73, %77 : vector<1x8xf32>
    %79 = vector.extract_strided_slice %0 {offsets = [0, 96], sizes = [1, 8], strides = [1, 1]} : vector<1x128xf32> to vector<1x8xf32>
    %80 = vector.extract_strided_slice %0 {offsets = [0, 104], sizes = [1, 8], strides = [1, 1]} : vector<1x128xf32> to vector<1x8xf32>
    %81 = arith.subf %80, %79 : vector<1x8xf32>
    %cst_24 = arith.constant -8.000000e+01 : f32
    %cst_25 = arith.constant 8.000000e+01 : f32
    %82 = vector.broadcast %cst_24 : f32 to vector<1x8xf32>
    %83 = arith.maximumf %82, %81 : vector<1x8xf32>
    %84 = vector.broadcast %cst_25 : f32 to vector<1x8xf32>
    %85 = arith.minimumf %84, %83 : vector<1x8xf32>
    %86 = math.exp %85 : vector<1x8xf32>
    %cst_26 = arith.constant 1.000000e+00 : f32
    %87 = vector.broadcast %cst_26 : f32 to vector<1x8xf32>
    %88 = arith.addf %87, %86 : vector<1x8xf32>
    %cst_27 = arith.constant 1.000000e+00 : f32
    %89 = vector.broadcast %cst_27 : f32 to vector<1x8xf32>
    %90 = arith.divf %89, %88 : vector<1x8xf32>
    %91 = arith.mulf %86, %90 : vector<1x8xf32>
    %92 = vector.extract_strided_slice %0 {offsets = [0, 112], sizes = [1, 8], strides = [1, 1]} : vector<1x128xf32> to vector<1x8xf32>
    %93 = vector.extract_strided_slice %0 {offsets = [0, 120], sizes = [1, 8], strides = [1, 1]} : vector<1x128xf32> to vector<1x8xf32>
    %94 = arith.subf %93, %92 : vector<1x8xf32>
    %cst_28 = arith.constant -8.000000e+01 : f32
    %cst_29 = arith.constant 8.000000e+01 : f32
    %95 = vector.broadcast %cst_28 : f32 to vector<1x8xf32>
    %96 = arith.maximumf %95, %94 : vector<1x8xf32>
    %97 = vector.broadcast %cst_29 : f32 to vector<1x8xf32>
    %98 = arith.minimumf %97, %96 : vector<1x8xf32>
    %99 = math.exp %98 : vector<1x8xf32>
    %cst_30 = arith.constant 1.000000e+00 : f32
    %100 = vector.broadcast %cst_30 : f32 to vector<1x8xf32>
    %101 = arith.addf %100, %99 : vector<1x8xf32>
    %cst_31 = arith.constant 1.000000e+00 : f32
    %102 = vector.broadcast %cst_31 : f32 to vector<1x8xf32>
    %103 = arith.divf %102, %101 : vector<1x8xf32>
    %104 = arith.mulf %99, %103 : vector<1x8xf32>
    %105 = tpu.concatenate %12, %25, %38, %51, %13, %26, %39, %52, %64, %77, %90, %103, %65, %78, %91, %104 in 1 : vector<1x8xf32>, vector<1x8xf32>, vector<1x8xf32>, vector<1x8xf32>, vector<1x8xf32>, vector<1x8xf32>, vector<1x8xf32>, vector<1x8xf32>, vector<1x8xf32>, vector<1x8xf32>, vector<1x8xf32>, vector<1x8xf32>, vector<1x8xf32>, vector<1x8xf32>, vector<1x8xf32>, vector<1x8xf32> -> vector<1x128xf32>
    %c0_32 = arith.constant 0 : index
    %c0_33 = arith.constant 0 : index
    %106 = vector.load %arg2[%c0_32, %c0_33] : memref<1x128xf32, #tpu.memory_space<vmem>>, vector<1x128xf32>
    tpu.vector_store %arg2[%c0_32, %c0_33], %105 {strides = array<i32>} : memref<1x128xf32, #tpu.memory_space<vmem>>, vector<1x128xf32>,
    return
  }
  func.func @transform_0(%arg0: i32) -> (i32, i32) {
    %c0_i32 = arith.constant 0 : i32
    %c0_i32_0 = arith.constant 0 : i32
    return %arg0, %c0_i32 : i32, i32
  }
  func.func @transform_1(%arg0: i32) -> (i32, i32) {
    %c0_i32 = arith.constant 0 : i32
    %c0_i32_0 = arith.constant 0 : i32
    return %arg0, %c0_i32 : i32, i32
  }
}

</mosaic_0001>

<bundles_post_ra>
// kernel: tpu_custom_call.1
= control target key start
LH: loop header
LB: loop body
LE: loop exit
PB: predicated region body
PF: predicated region fallthrough
CT: control target
= control target key end

     0   :  { %6 = vsyncpa [#allocation3], 0  ;;  %s195_s0 = inlined_call_operand.hbm [shape: f32[1,128], index: 0, kind: input, shape index: {}]   ;;  %s196_s1 = inlined_call_operand.hbm [shape: f32[1,128], index: 1, kind: output, shape index: {}]  }
   0x1   :  { %7 = vsyncpa [#allocation4], 0  ;;  %s170_s6 = smov [#allocation2]  }
   0x2   :  { %s14_s7 = sshll.u32 %s170_s6, 4  ;;  %s15_s7 = int_to_ptr.vmem [resolvable:$true] %s14_s7 }
   0x3   :  { %s134_s8 = scalar_lea.vmem %s15_s7, 16  ;;  %s138_s9 = scalar_lea.vmem %s15_s7, 32 }
   0x4   :  { %p135_p0 = scmp.ne.s32.totalorder %s15_s7, %s134_s8  ;;  %p139_p1 = scmp.lt.s32.totalorder %s15_s7, %s15_s7 }
   0x5   :  { %p140_p2 = scmp.lt.s32.totalorder %s138_s9, %s134_s8 }
   0x7   :  { %p141_p3 = por %p140_p2, %p139_p1 }
   0x9   :  { %p142_p4 = pnand %p141_p3, %p135_p0 }
   0xb   :  { %145 = shalt.err (!%p142_p4)
}
   0xc   :  { %17 = dma.hbm_to_vmem [thread:$0]  %s195_s0, 16, %s15_s7, [#allocation3]  }
   0xd   :  { %166 = dma.done.wait [#allocation3], 16  }
   0xe   :  { %167 = vsyncadd [#allocation3], 4294967280  ;;  %v21_v0 = vld [vmem:[#allocation2] sm:$0x1]  ;;  %s171_s12 = smov 8   ;;  %v36_v7 = vlaneseq  ;;  %s172_s13 = smov 112  }
   0xf   :  { %23 = vrot.lane.b32.xlu0 %v21_v0, %s171_s12  ;;  %s173_s0 = smov 120   ;;  %s174_s14 = smov 104   ;;  %vm66_vm0 = vcmask 64512   ;;  %vm68_vm1 = vcmask 130048   ;;  %vm70_vm2 = vcmask 195584   ;;  %vm72_vm3 = vcmask 261120  }
  0x10   :  { %v37_v8 = vshrl.u32 %v36_v7, 7  ;;  %s175_s15 = smov 96   ;;  %s176_s16 = smov 16   ;;  %vm74_vm4 = vcmask 326656   ;;  %vm76_vm5 = vcmask 392192   ;;  %vm78_vm6 = vcmask 457728  }
  0x11   :  { %s177_s17 = smov 24   ;;  %vm80_vm7 = vcmask 523264   ;;  %vm82_vm8 = vcmask 588800   ;;  %vm84_vm9 = vcmask 654336   ;;  %vm86_vm10 = vcmask 719872   ;;  %s178_s18 = smov [#allocation5]  }
  0x12   :  { %v38_v9 = vsub.s32 0, %v37_v8  ;;  %vm88_vm11 = vcmask 785408   ;;  %vm90_vm12 = vcmask 850944   ;;  %vm92_vm13 = vcmask 916480   ;;  %s103_s19 = sshll.u32 %s178_s18, 4  ;;  %s104_s19 = int_to_ptr.vmem [resolvable:$true] %s103_s19 }
  0x13   :  { %vm94_vm14 = vcmask 982016   ;;  %s146_s20 = scalar_lea.vmem %s104_s19, 16  ;;  %s150_s21 = scalar_lea.vmem %s104_s19, 32 }
  0x14   :  { %p147_p5 = scmp.ne.s32.totalorder %s104_s19, %s146_s20  ;;  %p151_p6 = scmp.lt.s32.totalorder %s104_s19, %s104_s19 }
  0x15   :  { %p152_p7 = scmp.lt.s32.totalorder %s150_s21, %s146_s20 }
  0x17   :  { %p153_p8 = por %p152_p7, %p151_p6 }
  0x19   :  { %p154_p9 = pnand %p153_p8, %p147_p5 }
  0x81   :  { %v24_v1 = vpop.permute.xlu0 %23 }
  0x82   :  { %v26_v2 = vsub.f32 %v21_v0, %v24_v1 }
  0x84   :  { %v112_v3 = vclamps-f32 %v26_v2, 80.0 }
  0x86   :  { %v29_v4 = vmul.f32 1.442695, %v112_v3 }
  0x88   :  { %122 = vpow2.f32 %v29_v4 }
  0x95   :  { %v123_v5 = vpop.eup %122 }
  0x96   :  { %v31_v6 = vadd.f32 1.0, %v123_v5 }
  0x98   :  { %124 = vrcp.f32 %v31_v6 }
  0xa5   :  { %v125_v10 = vpop.eup %124 }
  0xa6   :  { %v39_v11 = vrot.slane %v125_v10, %v38_v9  ;;  %v34_v12 = vmul.f32 %v125_v10, %v123_v5 }
  0xa8   :  { %43 = vrot.lane.b32.xlu1 %v39_v11, %s172_s13  ;;  %40 = vrot.lane.b32.xlu0 %v39_v11, %s173_s0  ;;  %v56_v13 = vrot.slane %v34_v12, %v38_v9 }
  0xac   :  { %46 = vrot.lane.b32.xlu1 %v39_v11, %s174_s14  ;;  %49 = vrot.lane.b32.xlu0 %v39_v11, %s175_s15 }
  0xb0   :  { %60 = vrot.lane.b32.xlu0 %v56_v13, %s176_s16  ;;  %57 = vrot.lane.b32.xlu1 %v56_v13, %s177_s17 }
  0xb4   :  { %63 = vrot.lane.b32.xlu1 %v56_v13, %s171_s12 }
 0x11a   :  { %v44_v14 = vpop.permute.xlu1 %43  ;;  %v41_v15 = vpop.permute.xlu0 %40 }
 0x11b   :  { %v67_v16 = vsel %vm66_vm0, %v41_v15, %v44_v14 }
 0x11e   :  { %v47_v17 = vpop.permute.xlu1 %46  ;;  %v50_v18 = vpop.permute.xlu0 %49 }
 0x11f   :  { %v69_v19 = vsel %vm68_vm1, %v67_v16, %v47_v17 }
 0x120   :  { %v71_v20 = vsel %vm70_vm2, %v69_v19, %v50_v18 }
 0x122   :  { %v58_v21 = vpop.permute.xlu1 %57  ;;  %v61_v22 = vpop.permute.xlu0 %60 }
 0x123   :  { %v73_v23 = vsel %vm72_vm3, %v71_v20, %v58_v21 }
 0x124   :  { %v75_v24 = vsel %vm74_vm4, %v73_v23, %v61_v22 }
 0x126   :  { %v64_v25 = vpop.permute.xlu1 %63 }
 0x127   :  { %v77_v26 = vsel %vm76_vm5, %v75_v24, %v64_v25 }
 0x128   :  { %v79_v27 = vsel %vm78_vm6, %v77_v26, %v34_v12 }
 0x129   :  { %v81_v28 = vsel %vm80_vm7, %v79_v27, %v41_v15 }
 0x12a   :  { %v83_v29 = vsel %vm82_vm8, %v81_v28, %v44_v14 }
 0x12b   :  { %v85_v30 = vsel %vm84_vm9, %v83_v29, %v47_v17 }
 0x12c   :  { %v87_v31 = vsel %vm86_vm10, %v85_v30, %v50_v18 }
 0x12d   :  { %v89_v32 = vsel %vm88_vm11, %v87_v31, %v58_v21 }
 0x12e   :  { %v91_v33 = vsel %vm90_vm12, %v89_v32, %v61_v22 }
 0x12f   :  { %v93_v34 = vsel %vm92_vm13, %v91_v33, %v64_v25 }
 0x130   :  { %v95_v35 = vsel %vm94_vm14, %v93_v34, %v34_v12 }
 0x131   :  { %96 = vst [vmem:[#allocation5] sm:$0x1] %v95_v35 }
 0x132   :  { %157 = shalt.err (!%p154_p9)
}
 0x133   :  { %106 = dma.vmem_to_hbm [thread:$0]  %s104_s19, 16, %s196_s1, [#allocation4]  }
 0x134   :  { %168 = dma.done.wait [#allocation4], 16  }
 0x135   :  { %169 = vsyncadd [#allocation4], 4294967280 }
 0x136   :  { %110 = vsyncpa [#allocation3], 1 }
 0x137   :  { %111 = vsyncpa [#allocation4], 1 }

</bundles_post_ra>
